<compile_context>
chip_gen: v7x
topology: tpu7x:2x2x1
jax: 0.10.0
libtpu: 0.0.40
codegen_flags: <defaults>
</compile_context>

<pallas_src>
import functools

import jax
import jax.numpy as jnp
from jax.experimental import pallas as pl
from jax.experimental.pallas import tpu as pltpu


def _leaky_relu(x, slope=0.2):
    return jnp.where(x > 0, x, slope * x)


def resblock_kernel(x_ref, w1_ref, b1_ref, w2_ref, b2_ref, o_ref, col_ref, *, pc):
    # x_ref  : (NB, LG, GC)      packed activations, G L-positions per 128-lane row
    # w*_ref : (2*GC, GC) bf16   block-banded packed conv weights
    # b*_ref : (1, GC)   f32     bias tiled over the G packed output positions
    # o_ref  : (NB, LG, GC)
    # col_ref: (NB, LG, 2*GC) bf16  im2col staging (8 positions of context / row)
    NB, LG, GC = x_ref.shape
    qc = GC - pc                      # pc = PAD*C lanes, qc = (G-PAD)*C lanes
    cdt = col_ref.dtype

    def im2col(h):
        # h: (NB, LG, GC) in staging dtype. Build, for each group row g, the
        # context window of 2G positions [g*G - PAD, g*G + 2G - PAD - 1]:
        #   Half A (lanes 0:GC)    <- positions g*G-PAD .. g*G+G-PAD-1
        #   Half B (lanes GC:2GC)  <- positions g*G+G-PAD .. g*G+2G-PAD-1
        # Only 4 shifted 64-lane copies + 2 tiny halo zero fills per conv;
        # no full-buffer zeroing (scratch is fully overwritten every call).
        col_ref[:, 1:LG, 0:pc] = h[:, 0:LG - 1, qc:GC]           # from group g-1
        col_ref[:, 0:1, 0:pc] = jnp.zeros((NB, 1, pc), cdt)      # left halo (pos < 0)
        col_ref[:, :, pc:GC] = h[:, :, 0:qc]                     # group g, head
        col_ref[:, :, GC:GC + pc] = h[:, :, qc:GC]               # group g, tail
        col_ref[:, 0:LG - 1, GC + pc:2 * GC] = h[:, 1:LG, 0:qc]  # from group g+1
        col_ref[:, LG - 1:LG, GC + pc:2 * GC] = jnp.zeros((NB, 1, qc), cdt)  # right halo
        return col_ref[...].reshape(NB * LG, 2 * GC)

    # --- LeakyReLU -> Conv1d #1 : one (NB*LG, 2GC) x (2GC, GC) MXU matmul ---
    h1 = _leaky_relu(x_ref[...]).astype(cdt)
    y1 = jnp.dot(im2col(h1), w1_ref[...],
                 preferred_element_type=jnp.float32) + b1_ref[...]   # (NB*LG, GC) f32

    # --- LeakyReLU -> Conv1d #2 ---
    h2 = _leaky_relu(y1).astype(cdt).reshape(NB, LG, GC)
    y2 = jnp.dot(im2col(h2), w2_ref[...],
                 preferred_element_type=jnp.float32) + b2_ref[...]   # (NB*LG, GC) f32

    # --- residual: re-read x (don't hold it live across both convs) ---
    o_ref[...] = (x_ref[...] + 0.3 * y2.reshape(NB, LG, GC)).astype(o_ref.dtype)


def _pack_conv_weight(w, G):
    """(C_out, C_in, K) -> (2*G*C_in, G*C_out) block-banded matrix.

    Row r*C_in + ci multiplies context position (g*G - PAD + r), input channel
    ci; column j*C_out + co produces output position (g*G + j), channel co.
    Entry = w[co, ci, r - j] when 0 <= r-j < K, else 0 (so k = r - j).
    """
    C_out, C_in, K = w.shape
    R = 2 * G
    Wb = jnp.zeros((R, C_in, G, C_out), dtype=jnp.float32)
    wf = w.astype(jnp.float32)
    for j in range(G):
        for k in range(K):
            Wb = Wb.at[j + k, :, j, :].set(jnp.transpose(wf[:, :, k]))
    return Wb.reshape(R * C_in, G * C_out)


def _choose_batch_block(N, LG, row_budget=4096, target_steps=8):
    """Largest batch block whose packed rows fit the VMEM row budget while
    keeping enough grid steps for pipelining / v7x megacore sharding."""
    divisors = [d for d in range(1, N + 1) if N % d == 0]
    step_targets = (min(target_steps, N), 2 if N >= 2 else 1, 1)
    for min_steps in step_targets:
        ok = [d for d in divisors if N // d >= min_steps and d * LG <= row_budget]
        if ok:
            return max(ok)
    return 1


def resblock_forward_nlc(x_nlc, w1, b1, w2, b2, *, batch_block=None):
    """Layout-native entry point.

    x_nlc: (N, L, C);  w*: PyTorch Conv1d weights (C_out, C_in, K);  b*: (C,).
    """
    N, L, C = x_nlc.shape
    C_out, C_in, K = w1.shape
    assert C_in == C and C_out == C and w2.shape == (C, C, K)
    assert K % 2 == 1
    PAD = (K - 1) // 2

    # TODO(synk): fall back to an unpacked (K*C-deep) im2col path when C does
    # not divide 128 or L is not a multiple of G.
    assert 128 % C == 0, "channel count must divide 128 for lane packing"
    G = 128 // C
    assert G >= K - 1, "need G >= K-1 so the 2G-position context covers the taps"
    assert L % G == 0, "sequence length must be a multiple of 128 // C"
    LG = L // G
    assert LG >= 2, "need at least 2 packed rows per sequence"
    GC = G * C  # 128

    if batch_block is None:
        batch_block = _choose_batch_block(N, LG)
    assert N % batch_block == 0
    num_blocks = N // batch_block

    # Static weight/bias packing (constant-folds under jit). bf16 weights,
    # f32 bias (added after the f32-accumulated matmul).
    w1_m = _pack_conv_weight(w1, G).astype(jnp.bfloat16)
    w2_m = _pack_conv_weight(w2, G).astype(jnp.bfloat16)
    b1_m = jnp.tile(b1.astype(jnp.float32), G).reshape(1, GC)
    b2_m = jnp.tile(b2.astype(jnp.float32), G).reshape(1, GC)

    # Pure (contiguous) reshape: pack G consecutive L positions onto lanes.
    x_pack = x_nlc.reshape(N, LG, GC)

    # Per-step VMEM footprint -> explicit scoped-VMEM limit.
    itm = x_nlc.dtype.itemsize
    blk_rows = batch_block * LG
    est = (2 * blk_rows * GC * itm            # double-buffered input block
           + 2 * blk_rows * GC * itm          # double-buffered output block
           + blk_rows * 2 * GC * 2            # bf16 im2col scratch
           + 2 * (2 * GC * GC * 2) + 2 * GC * 4   # weights + biases
           + 4 * blk_rows * GC * 4)           # f32 in-kernel temporaries
    vmem_limit = int(min(64 * 1024 * 1024, max(32 * 1024 * 1024, 2 * est)))

    out_pack = pl.pallas_call(
        functools.partial(resblock_kernel, pc=PAD * C),
        out_shape=jax.ShapeDtypeStruct((N, LG, GC), x_nlc.dtype),
        grid_spec=pltpu.PrefetchScalarGridSpec(
            num_scalar_prefetch=0,
            grid=(num_blocks,),
            in_specs=[
                pl.BlockSpec((batch_block, LG, GC), lambda i: (i, 0, 0)),
                pl.BlockSpec((2 * GC, GC), lambda i: (0, 0)),
                pl.BlockSpec((1, GC), lambda i: (0, 0)),
                pl.BlockSpec((2 * GC, GC), lambda i: (0, 0)),
                pl.BlockSpec((1, GC), lambda i: (0, 0)),
            ],
            out_specs=pl.BlockSpec((batch_block, LG, GC), lambda i: (i, 0, 0)),
            scratch_shapes=[pltpu.VMEM((batch_block, LG, 2 * GC), jnp.bfloat16)],
        ),
        compiler_params=pltpu.CompilerParams(
            dimension_semantics=("parallel",),
            vmem_limit_bytes=vmem_limit),
    )(x_pack, w1_m, b1_m, w2_m, b2_m)

    return out_pack.reshape(N, L, C)


def resblock_forward(x_ncl, w1, b1, w2, b2):
    """PyTorch-layout shim: x_ncl is (N, C, L) like nn.Conv1d input.

    In a real model, keep activations in (N, L, C) end-to-end and call
    resblock_forward_nlc directly to avoid these two transposes.
    """
    x_nlc = jnp.transpose(x_ncl, (0, 2, 1))
    out_nlc = resblock_forward_nlc(x_nlc, w1, b1, w2, b2)
    return jnp.transpose(out_nlc, (0, 2, 1))


def resblock_reference(x, w1, b1, w2, b2):
    """Pure-JAX reference replicating the PyTorch module semantics (NCL)."""
    def lrelu(v):
        return jnp.where(v > 0, v, 0.2 * v)

    def conv1d(h, w, b):
        y = jax.lax.conv_general_dilated(
            h, w, window_strides=(1,), padding=((2, 2),),
            dimension_numbers=('NCH', 'OIH', 'NCH'))
        return y + b[None, :, None]

    y = conv1d(lrelu(x), w1, b1)
    y = conv1d(lrelu(y), w2, b2)
    return x + 0.3 * y


if __name__ == "__main__":
    hidden = 32   # channels
    L = 16        # sequence length
    N = 2         # batch
    K = 5         # conv kernel size

    key = jax.random.PRNGKey(0)
    kx, kw1, kb1, kw2, kb2 = jax.random.split(key, 5)

    x = jax.random.normal(kx, (N, hidden, L), dtype=jnp.float32)
    # PyTorch Conv1d weight layout: (C_out, C_in, K)
    w1 = 0.1 * jax.random.normal(kw1, (hidden, hidden, K), dtype=jnp.float32)
    b1 = 0.1 * jax.random.normal(kb1, (hidden,), dtype=jnp.float32)
    w2 = 0.1 * jax.random.normal(kw2, (hidden, hidden, K), dtype=jnp.float32)
    b2 = 0.1 * jax.random.normal(kb2, (hidden,), dtype=jnp.float32)

    out = resblock_forward(x, w1, b1, w2, b2)
    out = jax.block_until_ready(out)

    ref = resblock_reference(x, w1, b1, w2, b2)
    assert out.shape == (N, hidden, L)
    # bf16 im2col staging / weights with f32 accumulation -> relaxed tolerance.
    assert jnp.allclose(out, ref, rtol=5e-2, atol=5e-2), "mismatch vs reference"

    print("KERNEL_OK")
</pallas_src>

<mosaic_0001>
module attributes {stable_mosaic.version = 11 : i64} {
  func.func @resblock_kernel(%arg0: i32, %arg1: memref<1x4x128xf32, #tpu.memory_space<vmem>>, %arg2: memref<256x128xbf16, #tpu.memory_space<vmem>>, %arg3: memref<1x128xf32, #tpu.memory_space<vmem>>, %arg4: memref<256x128xbf16, #tpu.memory_space<vmem>>, %arg5: memref<1x128xf32, #tpu.memory_space<vmem>>, %arg6: memref<1x4x128xf32, #tpu.memory_space<vmem>>, %arg7: memref<1x4x256xbf16, #tpu.memory_space<vmem>>) attributes {dimension_semantics = [#tpu.dimension_semantics<parallel>], iteration_bounds = array<i64: 2>, scalar_prefetch = 0 : i64, scratch_operands = 1 : i64, tpu.core_type = #tpu.core_type<tc>, window_params = [{transform_indices = @transform_0, window_bounds = array<i64: 1, 4, 128>}, {pipeline_mode = #tpu.pipeline_mode<synchronous>, transform_indices = @transform_1, window_bounds = array<i64: 256, 128>}, {pipeline_mode = #tpu.pipeline_mode<synchronous>, transform_indices = @transform_2, window_bounds = array<i64: 1, 128>}, {pipeline_mode = #tpu.pipeline_mode<synchronous>, transform_indices = @transform_3, window_bounds = array<i64: 256, 128>}, {pipeline_mode = #tpu.pipeline_mode<synchronous>, transform_indices = @transform_4, window_bounds = array<i64: 1, 128>}, {transform_indices = @transform_5, window_bounds = array<i64: 1, 4, 128>}]} {
    %c0 = arith.constant 0 : index
    %c0_0 = arith.constant 0 : index
    %c0_1 = arith.constant 0 : index
    %0 = vector.load %arg1[%c0, %c0_0, %c0_1] : memref<1x4x128xf32, #tpu.memory_space<vmem>>, vector<1x4x128xf32>
    %cst = arith.constant 0.000000e+00 : f32
    %1 = vector.broadcast %cst : f32 to vector<1x4x128xf32>
    %2 = arith.cmpf ogt, %0, %1 : vector<1x4x128xf32>
    %cst_2 = arith.constant 2.000000e-01 : f32
    %3 = vector.broadcast %cst_2 : f32 to vector<1x4x128xf32>
    %4 = arith.mulf %3, %0 : vector<1x4x128xf32>
    %5 = arith.select %2, %0, %4 : vector<1x4x128xi1>, vector<1x4x128xf32>
    %6 = arith.truncf %5 : vector<1x4x128xf32> to vector<1x4x128xbf16>
    %7 = vector.extract_strided_slice %6 {offsets = [0, 0, 64], sizes = [1, 3, 64], strides = [1, 1, 1]} : vector<1x4x128xbf16> to vector<1x3x64xbf16>
    %c0_3 = arith.constant 0 : index
    %c1 = arith.constant 1 : index
    %c0_4 = arith.constant 0 : index
    %8 = vector.load %arg7[%c0_3, %c1, %c0_4] : memref<1x4x256xbf16, #tpu.memory_space<vmem>>, vector<1x3x64xbf16>
    tpu.vector_store %arg7[%c0_3, %c1, %c0_4], %7 {strides = array<i32>} : memref<1x4x256xbf16, #tpu.memory_space<vmem>>, vector<1x3x64xbf16>,
    %cst_5 = arith.constant 0.000000e+00 : bf16
    %9 = vector.broadcast %cst_5 : bf16 to vector<1x1x64xbf16>
    %c0_6 = arith.constant 0 : index
    %c0_7 = arith.constant 0 : index
    %c0_8 = arith.constant 0 : index
    %10 = vector.load %arg7[%c0_6, %c0_7, %c0_8] : memref<1x4x256xbf16, #tpu.memory_space<vmem>>, vector<1x1x64xbf16>
    tpu.vector_store %arg7[%c0_6, %c0_7, %c0_8], %9 {strides = array<i32>} : memref<1x4x256xbf16, #tpu.memory_space<vmem>>, vector<1x1x64xbf16>,
    %11 = vector.extract_strided_slice %6 {offsets = [0, 0, 0], sizes = [1, 4, 64], strides = [1, 1, 1]} : vector<1x4x128xbf16> to vector<1x4x64xbf16>
    %c0_9 = arith.constant 0 : index
    %c0_10 = arith.constant 0 : index
    %c64 = arith.constant 64 : index
    %12 = vector.load %arg7[%c0_9, %c0_10, %c64] : memref<1x4x256xbf16, #tpu.memory_space<vmem>>, vector<1x4x64xbf16>
    tpu.vector_store %arg7[%c0_9, %c0_10, %c64], %11 {strides = array<i32>} : memref<1x4x256xbf16, #tpu.memory_space<vmem>>, vector<1x4x64xbf16>,
    %13 = vector.extract_strided_slice %6 {offsets = [0, 0, 64], sizes = [1, 4, 64], strides = [1, 1, 1]} : vector<1x4x128xbf16> to vector<1x4x64xbf16>
    %c0_11 = arith.constant 0 : index
    %c0_12 = arith.constant 0 : index
    %c128 = arith.constant 128 : index
    %14 = vector.load %arg7[%c0_11, %c0_12, %c128] : memref<1x4x256xbf16, #tpu.memory_space<vmem>>, vector<1x4x64xbf16>
    tpu.vector_store %arg7[%c0_11, %c0_12, %c128], %13 {strides = array<i32>} : memref<1x4x256xbf16, #tpu.memory_space<vmem>>, vector<1x4x64xbf16>,
    %15 = vector.extract_strided_slice %6 {offsets = [0, 1, 0], sizes = [1, 3, 64], strides = [1, 1, 1]} : vector<1x4x128xbf16> to vector<1x3x64xbf16>
    %c0_13 = arith.constant 0 : index
    %c0_14 = arith.constant 0 : index
    %c192 = arith.constant 192 : index
    %16 = vector.load %arg7[%c0_13, %c0_14, %c192] : memref<1x4x256xbf16, #tpu.memory_space<vmem>>, vector<1x3x64xbf16>
    tpu.vector_store %arg7[%c0_13, %c0_14, %c192], %15 {strides = array<i32>} : memref<1x4x256xbf16, #tpu.memory_space<vmem>>, vector<1x3x64xbf16>,
    %cst_15 = arith.constant 0.000000e+00 : bf16
    %17 = vector.broadcast %cst_15 : bf16 to vector<1x1x64xbf16>
    %c0_16 = arith.constant 0 : index
    %c3 = arith.constant 3 : index
    %c192_17 = arith.constant 192 : index
    %18 = vector.load %arg7[%c0_16, %c3, %c192_17] : memref<1x4x256xbf16, #tpu.memory_space<vmem>>, vector<1x1x64xbf16>
    tpu.vector_store %arg7[%c0_16, %c3, %c192_17], %17 {strides = array<i32>} : memref<1x4x256xbf16, #tpu.memory_space<vmem>>, vector<1x1x64xbf16>,
    %c0_18 = arith.constant 0 : index
    %c0_19 = arith.constant 0 : index
    %c0_20 = arith.constant 0 : index
    %19 = vector.load %arg7[%c0_18, %c0_19, %c0_20] : memref<1x4x256xbf16, #tpu.memory_space<vmem>>, vector<1x4x256xbf16>
    %20 = vector.shape_cast %19 : vector<1x4x256xbf16> to vector<4x256xbf16>
    %c0_21 = arith.constant 0 : index
    %c0_22 = arith.constant 0 : index
    %21 = vector.load %arg2[%c0_21, %c0_22] : memref<256x128xbf16, #tpu.memory_space<vmem>>, vector<256x128xbf16>
    %cst_23 = arith.constant dense<0.000000e+00> : vector<4x128xf32>
    %22 = tpu.matmul %20, %21, %cst_23 {dimension_numbers = #tpu.dot_dimension_numbers<[1], [0], [0], [1], [0, 0, 1, 1], [], []>} : vector<4x256xbf16>, vector<256x128xbf16>, vector<4x128xf32> -> vector<4x128xf32>
    %c0_24 = arith.constant 0 : index
    %c0_25 = arith.constant 0 : index
    %23 = vector.load %arg3[%c0_24, %c0_25] : memref<1x128xf32, #tpu.memory_space<vmem>>, vector<1x128xf32>
    %24 = vector.broadcast %23 : vector<1x128xf32> to vector<4x128xf32>
    %25 = arith.addf %22, %24 : vector<4x128xf32>
    %cst_26 = arith.constant 0.000000e+00 : f32
    %26 = vector.broadcast %cst_26 : f32 to vector<4x128xf32>
    %27 = arith.cmpf ogt, %25, %26 : vector<4x128xf32>
    %cst_27 = arith.constant 2.000000e-01 : f32
    %28 = vector.broadcast %cst_27 : f32 to vector<4x128xf32>
    %29 = arith.mulf %28, %25 : vector<4x128xf32>
    %30 = arith.select %27, %25, %29 : vector<4x128xi1>, vector<4x128xf32>
    %31 = arith.truncf %30 : vector<4x128xf32> to vector<4x128xbf16>
    %32 = vector.shape_cast %31 : vector<4x128xbf16> to vector<1x4x128xbf16>
    %33 = vector.extract_strided_slice %32 {offsets = [0, 0, 64], sizes = [1, 3, 64], strides = [1, 1, 1]} : vector<1x4x128xbf16> to vector<1x3x64xbf16>
    %c0_28 = arith.constant 0 : index
    %c1_29 = arith.constant 1 : index
    %c0_30 = arith.constant 0 : index
    %34 = vector.load %arg7[%c0_28, %c1_29, %c0_30] : memref<1x4x256xbf16, #tpu.memory_space<vmem>>, vector<1x3x64xbf16>
    tpu.vector_store %arg7[%c0_28, %c1_29, %c0_30], %33 {strides = array<i32>} : memref<1x4x256xbf16, #tpu.memory_space<vmem>>, vector<1x3x64xbf16>,
    %cst_31 = arith.constant 0.000000e+00 : bf16
    %35 = vector.broadcast %cst_31 : bf16 to vector<1x1x64xbf16>
    %c0_32 = arith.constant 0 : index
    %c0_33 = arith.constant 0 : index
    %c0_34 = arith.constant 0 : index
    %36 = vector.load %arg7[%c0_32, %c0_33, %c0_34] : memref<1x4x256xbf16, #tpu.memory_space<vmem>>, vector<1x1x64xbf16>
    tpu.vector_store %arg7[%c0_32, %c0_33, %c0_34], %35 {strides = array<i32>} : memref<1x4x256xbf16, #tpu.memory_space<vmem>>, vector<1x1x64xbf16>,
    %37 = vector.extract_strided_slice %32 {offsets = [0, 0, 0], sizes = [1, 4, 64], strides = [1, 1, 1]} : vector<1x4x128xbf16> to vector<1x4x64xbf16>
    %c0_35 = arith.constant 0 : index
    %c0_36 = arith.constant 0 : index
    %c64_37 = arith.constant 64 : index
    %38 = vector.load %arg7[%c0_35, %c0_36, %c64_37] : memref<1x4x256xbf16, #tpu.memory_space<vmem>>, vector<1x4x64xbf16>
    tpu.vector_store %arg7[%c0_35, %c0_36, %c64_37], %37 {strides = array<i32>} : memref<1x4x256xbf16, #tpu.memory_space<vmem>>, vector<1x4x64xbf16>,
    %39 = vector.extract_strided_slice %32 {offsets = [0, 0, 64], sizes = [1, 4, 64], strides = [1, 1, 1]} : vector<1x4x128xbf16> to vector<1x4x64xbf16>
    %c0_38 = arith.constant 0 : index
    %c0_39 = arith.constant 0 : index
    %c128_40 = arith.constant 128 : index
    %40 = vector.load %arg7[%c0_38, %c0_39, %c128_40] : memref<1x4x256xbf16, #tpu.memory_space<vmem>>, vector<1x4x64xbf16>
    tpu.vector_store %arg7[%c0_38, %c0_39, %c128_40], %39 {strides = array<i32>} : memref<1x4x256xbf16, #tpu.memory_space<vmem>>, vector<1x4x64xbf16>,
    %41 = vector.extract_strided_slice %32 {offsets = [0, 1, 0], sizes = [1, 3, 64], strides = [1, 1, 1]} : vector<1x4x128xbf16> to vector<1x3x64xbf16>
    %c0_41 = arith.constant 0 : index
    %c0_42 = arith.constant 0 : index
    %c192_43 = arith.constant 192 : index
    %42 = vector.load %arg7[%c0_41, %c0_42, %c192_43] : memref<1x4x256xbf16, #tpu.memory_space<vmem>>, vector<1x3x64xbf16>
    tpu.vector_store %arg7[%c0_41, %c0_42, %c192_43], %41 {strides = array<i32>} : memref<1x4x256xbf16, #tpu.memory_space<vmem>>, vector<1x3x64xbf16>,
    %cst_44 = arith.constant 0.000000e+00 : bf16
    %43 = vector.broadcast %cst_44 : bf16 to vector<1x1x64xbf16>
    %c0_45 = arith.constant 0 : index
    %c3_46 = arith.constant 3 : index
    %c192_47 = arith.constant 192 : index
    %44 = vector.load %arg7[%c0_45, %c3_46, %c192_47] : memref<1x4x256xbf16, #tpu.memory_space<vmem>>, vector<1x1x64xbf16>
    tpu.vector_store %arg7[%c0_45, %c3_46, %c192_47], %43 {strides = array<i32>} : memref<1x4x256xbf16, #tpu.memory_space<vmem>>, vector<1x1x64xbf16>,
    %c0_48 = arith.constant 0 : index
    %c0_49 = arith.constant 0 : index
    %c0_50 = arith.constant 0 : index
    %45 = vector.load %arg7[%c0_48, %c0_49, %c0_50] : memref<1x4x256xbf16, #tpu.memory_space<vmem>>, vector<1x4x256xbf16>
    %46 = vector.shape_cast %45 : vector<1x4x256xbf16> to vector<4x256xbf16>
    %c0_51 = arith.constant 0 : index
    %c0_52 = arith.constant 0 : index
    %47 = vector.load %arg4[%c0_51, %c0_52] : memref<256x128xbf16, #tpu.memory_space<vmem>>, vector<256x128xbf16>
    %cst_53 = arith.constant dense<0.000000e+00> : vector<4x128xf32>
    %48 = tpu.matmul %46, %47, %cst_53 {dimension_numbers = #tpu.dot_dimension_numbers<[1], [0], [0], [1], [0, 0, 1, 1], [], []>} : vector<4x256xbf16>, vector<256x128xbf16>, vector<4x128xf32> -> vector<4x128xf32>
    %c0_54 = arith.constant 0 : index
    %c0_55 = arith.constant 0 : index
    %49 = vector.load %arg5[%c0_54, %c0_55] : memref<1x128xf32, #tpu.memory_space<vmem>>, vector<1x128xf32>
    %50 = vector.broadcast %49 : vector<1x128xf32> to vector<4x128xf32>
    %51 = arith.addf %48, %50 : vector<4x128xf32>
    %c0_56 = arith.constant 0 : index
    %c0_57 = arith.constant 0 : index
    %c0_58 = arith.constant 0 : index
    %52 = vector.load %arg1[%c0_56, %c0_57, %c0_58] : memref<1x4x128xf32, #tpu.memory_space<vmem>>, vector<1x4x128xf32>
    %53 = vector.shape_cast %51 : vector<4x128xf32> to vector<1x4x128xf32>
    %cst_59 = arith.constant 3.000000e-01 : f32
    %54 = vector.broadcast %cst_59 : f32 to vector<1x4x128xf32>
    %55 = arith.mulf %54, %53 : vector<1x4x128xf32>
    %56 = arith.addf %52, %55 : vector<1x4x128xf32>
    %c0_60 = arith.constant 0 : index
    %c0_61 = arith.constant 0 : index
    %c0_62 = arith.constant 0 : index
    %57 = vector.load %arg6[%c0_60, %c0_61, %c0_62] : memref<1x4x128xf32, #tpu.memory_space<vmem>>, vector<1x4x128xf32>
    tpu.vector_store %arg6[%c0_60, %c0_61, %c0_62], %56 {strides = array<i32>} : memref<1x4x128xf32, #tpu.memory_space<vmem>>, vector<1x4x128xf32>,
    return
  }
  func.func @transform_0(%arg0: i32) -> (i32, i32, i32) {
    %c0_i32 = arith.constant 0 : i32
    %c0_i32_0 = arith.constant 0 : i32
    %c0_i32_1 = arith.constant 0 : i32
    return %arg0, %c0_i32, %c0_i32_0 : i32, i32, i32
  }
  func.func @transform_1(%arg0: i32) -> (i32, i32) {
    %c0_i32 = arith.constant 0 : i32
    %c0_i32_0 = arith.constant 0 : i32
    %c0_i32_1 = arith.constant 0 : i32
    return %c0_i32, %c0_i32_0 : i32, i32
  }
  func.func @transform_2(%arg0: i32) -> (i32, i32) {
    %c0_i32 = arith.constant 0 : i32
    %c0_i32_0 = arith.constant 0 : i32
    %c0_i32_1 = arith.constant 0 : i32
    return %c0_i32, %c0_i32_0 : i32, i32
  }
  func.func @transform_3(%arg0: i32) -> (i32, i32) {
    %c0_i32 = arith.constant 0 : i32
    %c0_i32_0 = arith.constant 0 : i32
    %c0_i32_1 = arith.constant 0 : i32
    return %c0_i32, %c0_i32_0 : i32, i32
  }
  func.func @transform_4(%arg0: i32) -> (i32, i32) {
    %c0_i32 = arith.constant 0 : i32
    %c0_i32_0 = arith.constant 0 : i32
    %c0_i32_1 = arith.constant 0 : i32
    return %c0_i32, %c0_i32_0 : i32, i32
  }
  func.func @transform_5(%arg0: i32) -> (i32, i32, i32) {
    %c0_i32 = arith.constant 0 : i32
    %c0_i32_0 = arith.constant 0 : i32
    %c0_i32_1 = arith.constant 0 : i32
    return %arg0, %c0_i32, %c0_i32_0 : i32, i32, i32
  }
}

</mosaic_0001>

<bundles_post_ra>
// kernel: tpu_custom_call.1
= control target key start
LH: loop header
LB: loop body
LE: loop exit
PB: predicated region body
PF: predicated region fallthrough
CT: control target
= control target key end

     0   :  { %10 = vsyncpa [#allocation4], 0  ;;  %s1544_s0 = inlined_call_operand.hbm [shape: f32[2,4,128], index: 0, kind: input, shape index: {}]   ;;  %s1545_s1 = inlined_call_operand.hbm [shape: bf16[256,128], index: 1, kind: input, shape index: {}]   ;;  %s1546_s2 = inlined_call_operand.vmem [shape: f32[1,128], index: 2, kind: input, shape index: {}]   ;;  %s1547_s3 = inlined_call_operand.hbm [shape: bf16[256,128], index: 3, kind: input, shape index: {}]   ;;  %s1548_s4 = inlined_call_operand.vmem [shape: f32[1,128], index: 4, kind: input, shape index: {}]   ;;  %s1549_s5 = inlined_call_operand.hbm [shape: f32[2,4,128], index: 5, kind: output, shape index: {}]  }
   0x1   :  { %12 = vsyncpa [#allocation4 + $0x1], 0 }
   0x2   :  { %13 = vsyncpa [#allocation7], 0 }
   0x3   :  { %14 = vsyncpa [#allocation5], 0 }
   0x4   :  { %16 = vsyncpa [#allocation5 + $0x1], 0  ;;  %s1253_s18 = smov 0   ;;  %s1255_s19 = smov 0  }
   0x5   :  { %s1257_s20 = smov 0   ;;  %s1259_s21 = smov 0  }
   0x6 LB: > { %s1274_s22 = sadd.s32 4294967295, %s1213_s21   ;;  %s858_s23 = sadd.s32 4294967294, %s1213_s21   ;;  %s1213_s21 = sphi %s1259_s21, %s1577_s21   ;;  %s1209_s20 = sphi %s1257_s20, %s1576_s20   ;;  %s1205_s19 = sphi %s1255_s19, %s1575_s19   ;;  %s1201_s18 = sphi %s1253_s18, %s1574_s18  }
   0x7   : > { %p42_p0 = scmp.ne.s32.totalorder %s1205_s19, %s1201_s18  ;;  %p1550_p1 = scmp.eq.s32.totalorder %s1274_s22, 0 }
   0x8   : > { %p156_p3 = scmp.eq.s32.totalorder %s858_s23, 1  ;;  %p859_p5 = scmp.ge.s32.totalorder %s1213_s21, 1 }
   0x9   : > { %p1283_p4 = por %p1550_p1, %p42_p0  ;;  %p163_p7 = scmp.lt.s32.totalorder %s1213_s21, 3 }
   0xa   : > { %p1288_p6 = por %p156_p3, %p42_p0  ;;  %s1215_s27 = smov [#allocation6]  }
   0xb   : > { %s1553_s24 = scalar_select %p1283_p4, 1, 0 }
   0xc   : > { %s1554_s25 = scalar_select %p1288_p6, 1, 0 }
   0xd   : > { %p1293_p8 = pnand %p859_p5, %p163_p7  ;;  %s175_s28 = sshll.u32 %s1215_s27, 4  ;;  %s1297_s28 = int_to_ptr.vmem [resolvable:$true] %s175_s28 }
   0xe   : > { %s1216_s30 = smov [#allocation8]   ;;  %s1057_s9 = scalar_lea.hbm %s1545_s1, 2048 }
   0xf   : > { %p966_p9 = pneg %p1293_p8  ;;  %s191_s6 = sshll.u32 %s1216_s30, 4  ;;  %s1308_s6 = int_to_ptr.vmem [resolvable:$true] %s191_s6 }
  0x10   : > { %p1058_p12 = scmp.ne.s32.totalorder %s1545_s1, %s1057_s9  ;;  %p1064_p5 = scmp.lt.u32.totalorder %s1057_s9, %s1545_s1 }
  0x11   : > { %p1304_p11 = pnand %p966_p9, %p1550_p1 }
  0x13   : > { %p1059_p13 = pneg %p1304_p11 }
  0x15   : > { %p1060_p0 = pnand %p1059_p13, %p1058_p12 }
  0x17   : > { %p1061_p3 = pneg %p1060_p0 }
  0x19   : > { %p1066_p7 = pnand %p1064_p5, %p1061_p3 }
  0x1b   : > { %1069 = shalt.err (!%p1066_p7)
}
  0x1c   : > { %s1070_s14 = scalar_lea.vmem %s1297_s28, 2048  ;;  %p1078_p2 = scmp.lt.s32.totalorder %s1297_s28, %s1297_s28 }
  0x1d   : > { %p1071_p9 = scmp.ne.s32.totalorder %s1297_s28, %s1070_s14  ;;  %p1079_p12 = scmp.lt.s32.totalorder %s1070_s14, %s1070_s14 }
  0x1f   : > { %p1073_p10 = pnand %p1071_p9, %p1059_p13  ;;  %p1080_p0 = por %p1079_p12, %p1078_p2 }
  0x21   : > { %p1074_p1 = pneg %p1073_p10 }
  0x23   : > { %p1081_p6 = pnand %p1080_p0, %p1074_p1 }
  0x25   : > { %1084 = shalt.err (!%p1081_p6)
}
  0x26   : > { %s1217_s15 = smov 64   ;;  %s1218_s16 = smov 4  }
  0x27   : > { %969 = dma.hbm_to_vmem [thread:$0]  (!%p1304_p11), %s1545_s1, 2048, %s1297_s28, [#allocation7], %s1217_s15, %s1217_s15, %s1218_s16  }
  0x28   : > { %s1085_s7 = scalar_lea.hbm %s1547_s3, 2048 }
  0x29   : > { %p1086_p2 = scmp.ne.s32.totalorder %s1547_s3, %s1085_s7  ;;  %p1092_p10 = scmp.lt.u32.totalorder %s1085_s7, %s1547_s3 }
  0x2b   : > { %p1088_p1 = pnand %p1086_p2, %p1059_p13 }
  0x2d   : > { %p1089_p6 = pneg %p1088_p1 }
  0x2f   : > { %p1094_p3 = pnand %p1092_p10, %p1089_p6 }
  0x31   : > { %1097 = shalt.err (!%p1094_p3)
}
  0x32   : > { %s1098_s28 = scalar_lea.vmem %s1308_s6, 2048  ;;  %p1106_p12 = scmp.lt.s32.totalorder %s1308_s6, %s1308_s6 }
  0x33   : > { %p1099_p5 = scmp.ne.s32.totalorder %s1308_s6, %s1098_s28  ;;  %p1107_p0 = scmp.lt.s32.totalorder %s1098_s28, %s1098_s28 }
  0x35   : > { %p1101_p7 = pnand %p1099_p5, %p1059_p13  ;;  %p1108_p2 = por %p1107_p0, %p1106_p12 }
  0x37   : > { %p1102_p9 = pneg %p1101_p7 }
  0x39   : > { %p1109_p1 = pnand %p1108_p2, %p1102_p9 }
  0x3b   : > { %1112 = shalt.err (!%p1109_p1)
}
  0x3c   : > { %972 = dma.hbm_to_vmem [thread:$0]  (!%p1304_p11), %s1547_s3, 2048, %s1308_s6, [#allocation7], %s1217_s15, %s1217_s15, %s1218_s16  }
  0x3d   : > { %s1363_s14 = sadd.s32 1, %s1213_s21   ;;  %s29_s29 = sadd.s32 1, %s1209_s20 }
  0x3e   : > { %s26_s17 = ssub.s32 %s1213_s21, %s1363_s14  ;;  %p36_p13 = scmp.ne.s32.totalorder %s1209_s20, %s1205_s19 }
  0x3f   : > { %p27_p6 = scmp.eq.s32.totalorder %s26_s17, 0  ;;  %p37_p10 = scmp.eq.s32.totalorder %s1213_s21, 0 }
  0x40   : > { %p1557_p3 = scmp.eq.s32.totalorder %s1274_s22, 1  ;;  %p983_p7 = scmp.lt.s32.totalorder %s1213_s21, 2 }
  0x41   : > { %s1379_s27 = scalar_select %p27_p6, %s1209_s20, %s29_s29  }
  0x42   : > { %p1373_p5 = por %p1557_p3, %p36_p13  ;;  %p38_p9 = por %p37_p10, %p36_p13 }
  0x43   : > { %s208_s30 = sand.u32 1, %s1209_s20   ;;  %s864_s6 = sshll.u32 %s1213_s21, 6 }
  0x44   : > { %s1558_s23 = scalar_select %p1373_p5, 1, 0 }
  0x45   : > { %s863_s7 = sshll.u32 %s208_s30, 2  ;;  %s1386_s8 = scalar_lea.hbm %s1544_s0, %s864_s6 }
  0x46   : > { %s212_s9 = scalar_lea.vmem [#allocation3], %s863_s7  ;;  %p1390_p11 = pnand %p983_p7, %p38_p9 }
  0x47   : > { %s219_s10 = sshll.u32 %s212_s9, 4  ;;  %s209_s28 = scalar_lea.sflag [#allocation4], %s208_s30  ;;  %s1388_s10 = int_to_ptr.vmem [resolvable:$true] %s219_s10 }
  0x48   : > { %s1113_s12 = scalar_lea.hbm %s1386_s8, 64  ;;  %p1115_p0 = pneg %p1390_p11 }
  0x49   : > { %p1114_p12 = scmp.ne.s32.totalorder %s1386_s8, %s1113_s12  ;;  %s1118_s17 = scalar_lea.hbm %s1544_s0, 128 }
  0x4a   : > { %p1119_p13 = scmp.lt.u32.totalorder %s1386_s8, %s1544_s0  ;;  %p1120_p6 = scmp.lt.u32.totalorder %s1118_s17, %s1113_s12 }
  0x4b   : > { %p1116_p2 = pnand %p1115_p0, %p1114_p12  ;;  %p1122_p3 = scmp.lt.u32.totalorder %s1113_s12, %s1386_s8 }
  0x4c   : > { %p1121_p10 = por %p1120_p6, %p1119_p13 }
  0x4d   : > { %p1117_p1 = pneg %p1116_p2 }
  0x4e   : > { %p1123_p7 = por %p1122_p3, %p1121_p10 }
  0x50   : > { %p1124_p9 = pnand %p1123_p7, %p1117_p1 }
  0x52   : > { %1127 = shalt.err (!%p1124_p9)
}
  0x53   : > { %s1128_s30 = scalar_lea.vmem %s1388_s10, 64  ;;  %s1219_s15 = smov [#allocation3]  }
  0x54   : > { %p1129_p12 = scmp.ne.s32.totalorder %s1388_s10, %s1128_s30  ;;  %s1133_s16 = sshll.u32 %s1219_s15, 4  ;;  %s1134_s16 = int_to_ptr.vmem [resolvable:$false] %s1133_s16 }
  0x55   : > { %s1135_s9 = scalar_lea.vmem %s1134_s16, 128  ;;  %p1136_p4 = scmp.lt.s32.totalorder %s1388_s10, %s1134_s16 }
  0x56   : > { %p1131_p2 = pnand %p1129_p12, %p1115_p0  ;;  %p1137_p13 = scmp.lt.s32.totalorder %s1135_s9, %s1128_s30 }
  0x58   : > { %p1132_p5 = pneg %p1131_p2  ;;  %p1138_p6 = por %p1137_p13, %p1136_p4 }
  0x5a   : > { %p1139_p10 = pnand %p1138_p6, %p1132_p5 }
  0x5c   : > { %1142 = shalt.err (!%p1139_p10)
}
  0x5d   : > { %976 = dma.hbm_to_vmem [thread:$0]  (!%p1390_p11), %s1386_s8, 64, %s1388_s10, %s209_s28  }
  0x5e   : > { %228 = sbr.rel (%p1293_p8) target bundleno = 861 (0x35d), region = 40  ;;  %s1422_s12 = sand.u32 (!%p1293_p8), 1, %s1205_s19  }
  0x5f   : > { %s866_s13 = sshll.u32 (!%p1293_p8), %s1422_s12, 2  ;;  %s231_s29 = scalar_lea.sflag (!%p1293_p8), [#allocation4], %s1422_s12 }
  0x60   : > { %s1428_s17 = scalar_lea.vmem (!%p1293_p8), [#allocation3], %s866_s13  ;;  %p1560_p4 = scmp.ne.s32.totalorder (!%p1293_p8), %s1553_s24, 0 }
  0x65   : > { %1188 = dma.done.wait (%p1560_p4), %s231_s29, 64  }
  0x66   : > { %1190 = vsyncadd (%p1560_p4), %s231_s29, 4294967232  ;;  %p1561_p5 = scmp.eq.s32.totalorder %s1274_s22, 0 }
  0x68   : > { %1192 = dma.done.wait (%p1561_p5), [#allocation7], 4096   ;;  %p1562_p8 = pmov %p1561_p5 }
  0x69   : > { %v1220_v0 = vmov 1983009808   ;;  %v279_v2 = vlaneseq  ;;  %v270_v5 = vld [vmem:[%s1428_s17] sm:$0xf]  ;;  %v1025_v7 = vld [vmem:[#allocation6 + $0x40] sm:$0xff]   ;;  %v1027_v11 = vld [vmem:[#allocation6 + $0x48] sm:$0xff]  }
  0x6a   : > { %1194 = vsyncadd (%p1562_p8), [#allocation7], 4294963200  ;;  %v277_v1 = vunpack.c.l.s4 %v1220_v0  ;;  %vm271_vm0 = vcmp.gt.f32.partialorder %v270_v5, 0.0  ;;  %v272_v6 = vmul.f32 0.2, %v270_v5  ;;  %v1026_v9 = vld [vmem:[#allocation6] sm:$0xff]   ;;  %910 = vmatprep.subr.bf16.mxu0 %v1025_v7 }
  0x6b   : > { %v280_v4 = vshrl.u32 %v279_v2, 7  ;;  %911 = vmatpush3.bf16.msra.mxu0 %v1026_v9  ;;  %v1028_v13 = vld [vmem:[#allocation6 + $0x8] sm:$0xff]   ;;  %v1029_v14 = vld [vmem:[#allocation6 + $0x50] sm:$0xff]   ;;  %s1221_s24 = smov 64   ;;  %v1031_v19 = vld [vmem:[#allocation6 + $0x58] sm:$0xff]   ;;  %vm293_vm1 = vcmask 517120  }
  0x6c   : > { %v278_v3 = vunpack.c.0.s8 %v277_v1  ;;  %v273_v10 = vsel %vm271_vm0, %v270_v5, %v272_v6  ;;  %912 = vmatprep.subr.bf16.mxu0 %v1027_v11  ;;  %v1030_v18 = vld [vmem:[#allocation6 + $0x10] sm:$0xff]   ;;  %v1032_v25 = vld [vmem:[#allocation6 + $0x18] sm:$0xff]   ;;  %v1033_v26 = vld [vmem:[#allocation6 + $0x60] sm:$0xff]   ;;  %vm294_vm2 = vsmask.f32 7938  ;;  %vm308_vm3 = vcmask 1041920  }
  0x6d   : > { %v274_v12 = vpack.c.bf16 %v273_v10, %v273_v10  ;;  %v1034_v28 = vld [vmem:[#allocation6 + $0x20] sm:$0xff]   ;;  %v1035_v29 = vld [vmem:[#allocation6 + $0x68] sm:$0xff]   ;;  %v1037_v31 = vld [vmem:[#allocation6 + $0x70] sm:$0xff]   ;;  %vm320_vm4 = vsmask.f32 1280  ;;  %vm299_vm7 = vcmask 516096  }
  0x6e   : > { %v1439_v8 = vsub.s32 %v278_v3, %v280_v4  ;;  %v1036_v30 = vld [vmem:[#allocation6 + $0x28] sm:$0xff]   ;;  %v1038_v32 = vld [vmem:[#allocation6 + $0x30] sm:$0xff]   ;;  %v1039_v33 = vld [vmem:[#allocation6 + $0x78] sm:$0xff]   ;;  %vm300_vm8 = vsmask.f32 256  ;;  %vm325_vm9 = vcmask 1041921  }
  0x6f   : > { %913 = vmatpush3.bf16.msra.mxu0 %v1028_v13  ;;  %v1040_v34 = vld [vmem:[#allocation6 + $0x38] sm:$0xff]   ;;  %vm1447_vm5 = vmand %vm293_vm1, %vm294_vm2  ;;  %v296_v37 = vld [vmem:[#allocation2] sm:$0x3]  ;;  %vm326_vm10 = vsmask.f32 7942  ;;  %s907_s28 = sshll.u32 %s1274_s22, 6 }
  0x70   : > { %v282_v15 = vrot.slane %v274_v12, %v1439_v8  ;;  %914 = vmatprep.subr.bf16.mxu0 %v1029_v14  ;;  %vm1452_vm6 = vmand %vm308_vm3, %vm320_vm4  ;;  %v1041_v52 = vld [vmem:[#allocation8 + $0x40] sm:$0xff]   ;;  %v1043_v54 = vld [vmem:[#allocation8 + $0x48] sm:$0xff]   ;;  %s268_s7 = scalar_lea.vmem [#allocation9], %s866_s13  ;;  %s1500_s16 = scalar_lea.hbm %s1549_s5, %s907_s28 }
  0x71   : > { %vm1460_vm11 = vmand %vm299_vm7, %vm300_vm8  ;;  %v1042_v53 = vld [vmem:[#allocation8] sm:$0xff]   ;;  %932 = vmatprep.subr.bf16.mxu1 %v1041_v52  ;;  %v1044_v56 = vld [vmem:[#allocation8 + $0x8] sm:$0xff]   ;;  %s769_s6 = sshll.u32 %s268_s7, 4  ;;  %s756_s9 = scalar_lea.sflag [#allocation5], %s1422_s12  ;;  %s1502_s6 = int_to_ptr.vmem [resolvable:$true] %s769_s6 }
  0x72   : > { %305 = vrot.lane.b32.xlu0 %v282_v15, %s1221_s24  ;;  %v284_v16 = vshrl.u32 %v282_v15, 16  ;;  %v287_v17 = vshll.u32 %v282_v15, 16  ;;  %vm1464_vm12 = vmand %vm325_vm9, %vm326_vm10  ;;  %933 = vmatpush3.bf16.msra.mxu1 %v1042_v53  ;;  %v1045_v57 = vld [vmem:[#allocation8 + $0x50] sm:$0xff]   ;;  %v1047_v2 = vld [vmem:[#allocation8 + $0x58] sm:$0xff]   ;;  %s1143_s29 = scalar_lea.vmem %s1502_s6, 64  ;;  %p1571_p0 = scmp.ne.s32.totalorder %s1558_s23, 0 }
  0x73   : > { %915 = vmatpush3.bf16.msra.mxu0 %v1030_v18  ;;  %v870_v58 = vld [vmem:[%s1546_s2] ss:$0 sm:$0xff]  ;;  %934 = vmatprep.subr.bf16.mxu1 %v1043_v54  ;;  %v1048_v4 = vld [vmem:[#allocation8 + $0x18] sm:$0xff]   ;;  %v1049_v7 = vld [vmem:[#allocation8 + $0x60] sm:$0xff]   ;;  %p1144_p11 = scmp.ne.s32.totalorder %s1502_s6, %s1143_s29  ;;  %s1222_s22 = smov [#allocation9]  }
  0x74   : > { %v286_v20 = vrot.slane %v284_v16, 7  ;;  %v312_v21 = vrot.slane %v284_v16, 6  ;;  %v313_v22 = vrot.slane %v287_v17, 7  ;;  %916 = vmatprep.subr.bf16.mxu0 %v1031_v19  ;;  %v1046_v0 = vld [vmem:[#allocation8 + $0x10] sm:$0xff]   ;;  %v1050_v9 = vld [vmem:[#allocation8 + $0x20] sm:$0xff]   ;;  %v1051_v15 = vld [vmem:[#allocation8 + $0x68] sm:$0xff]  }
  0x75   : > { %v1052_v16 = vld [vmem:[#allocation8 + $0x28] sm:$0xff]   ;;  %v1053_v19 = vld [vmem:[#allocation8 + $0x70] sm:$0xff]   ;;  %p1145_p1 = pnand %p1144_p11, %p1571_p0  ;;  %s1147_s13 = sshll.u32 %s1222_s22, 4  ;;  %s1148_s13 = int_to_ptr.vmem [resolvable:$false] %s1147_s13 }
  0x76   : > { %v289_v23 = vor.u32 %v287_v17, %v286_v20  ;;  %v314_v24 = vor.u32 %v313_v22, %v312_v21  ;;  %935 = vmatpush3.bf16.msra.mxu1 %v1044_v56  ;;  %v1054_v20 = vld [vmem:[#allocation8 + $0x30] sm:$0xff]   ;;  %v1055_v21 = vld [vmem:[#allocation8 + $0x78] sm:$0xff]   ;;  %p1150_p7 = scmp.lt.s32.totalorder %s1502_s6, %s1148_s13 }
  0x77   : > { %917 = vmatpush3.bf16.msra.mxu0 %v1032_v25  ;;  %936 = vmatprep.subr.bf16.mxu1 %v1045_v57  ;;  %v1056_v22 = vld [vmem:[#allocation8 + $0x38] sm:$0xff]   ;;  %p1146_p3 = pneg %p1145_p1 }
  0x78   : > { %290 = vrot.lane.b32.xlu0 %v289_v23, %s1221_s24  ;;  %v315_v27 = vrot.slane %v314_v24, 2  ;;  %918 = vmatprep.subr.bf16.mxu0 %v1033_v26 }
  0x7a   : > { %316 = vrot.lane.b32.xlu1 %v315_v27, %s1221_s24  ;;  %937 = vmatpush3.bf16.msra.mxu1 %v1046_v0 }
  0x7b   : > { %919 = vmatpush3.bf16.msra.mxu0 %v1034_v28  ;;  %938 = vmatprep.subr.bf16.mxu1 %v1047_v2 }
  0x7c   : > { %920 = vmatprep.subr.bf16.mxu0 %v1035_v29 }
  0x7e   : > { %939 = vmatpush3.bf16.msra.mxu1 %v1048_v4 }
  0x7f   : > { %921 = vmatpush3.bf16.msra.mxu0 %v1036_v30  ;;  %940 = vmatprep.subr.bf16.mxu1 %v1049_v7 }
  0x80   : > { %922 = vmatprep.subr.bf16.mxu0 %v1037_v31 }
  0x82   : > { %941 = vmatpush3.bf16.msra.mxu1 %v1050_v9 }
  0x83   : > { %923 = vmatpush3.bf16.msra.mxu0 %v1038_v32  ;;  %942 = vmatprep.subr.bf16.mxu1 %v1051_v15 }
  0x84   : > { %924 = vmatprep.subr.bf16.mxu0 %v1039_v33 }
  0x86   : > { %943 = vmatpush3.bf16.msra.mxu1 %v1052_v16 }
  0x87   : > { %925 = vmatpush3.bf16.msra.mxu0 %v1040_v34  ;;  %944 = vmatprep.subr.bf16.mxu1 %v1053_v19 }
  0x8a   : > { %945 = vmatpush3.bf16.msra.mxu1 %v1054_v20 }
  0x8b   : > { %946 = vmatprep.subr.bf16.mxu1 %v1055_v21 }
  0x8e   : > { %947 = vmatpush3.bf16.msra.mxu1 %v1056_v22 }
  0xe4   : > { %v306_v35 = vpop.permute.xlu0 %305 }
  0xe5   : > { %311 = vst.msk [vmem:[#allocation2 + $0x2] sm:$0x3] %vm293_vm1, %v306_v35 }
  0xea   : > { %v291_v38 = vpop.permute.xlu0 %290 }
  0xeb   : > { %v297_v40 = vsel %vm1447_vm5, %v291_v38, %v296_v37  ;;  %v888_v37 = vld [vmem:[%s1548_s4] ss:$0 sm:$0xff] }
  0xec   : > { %298 = vst [vmem:[#allocation2] sm:$0x3] %v297_v40  ;;  %v322_v41 = vld [vmem:[#allocation2 + $0x2] sm:$0x3]  ;;  %v317_v42 = vpop.permute.xlu1 %316 }
  0xed   : > { %v323_v43 = vsel %vm1452_vm6, %v317_v42, %v322_v41 }
  0xee   : > { %324 = vst [vmem:[#allocation2 + $0x2] sm:$0x3] %v323_v43  ;;  %v751_v43 = vld [vmem:[%s1428_s17] sm:$0xf]  ;;  %s1149_s17 = scalar_lea.vmem %s1148_s13, 128 }
  0xef   : > { %p1151_p9 = scmp.lt.s32.totalorder %s1149_s17, %s1143_s29 }
  0xf1   : > { %p1152_p12 = por %p1151_p9, %p1150_p7 }
  0xf3   : > { %v302_v45 = vld [vmem:[#allocation2] sm:$0x1]  ;;  %p1153_p2 = pnand %p1152_p12, %p1146_p3 }
  0xf4   : > { %v303_v47 = vsel %vm1460_vm11, 0, %v302_v45 }
  0xf5   : > { %304 = vst [vmem:[#allocation2] sm:$0x1] %v303_v47  ;;  %v328_v48 = vld [vmem:[#allocation2 + $0x2] sm:$0x2] }
  0xf6   : > { %309 = vst.msk [vmem:[#allocation2] sm:$0x3] %vm308_vm3, %v306_v35  ;;  %v329_v49 = vsel %vm1464_vm12, 0, %v328_v48 }
  0xf7   : > { %330 = vst [vmem:[#allocation2 + $0x2] sm:$0x2] %v329_v49 }
  0xfd   : > { %v540_v24 = vld [vmem:[#allocation2] sm:$0x3] }
  0xfe   : > { %v871_v50 = vld.sshfl [vmem:[#allocation2] sm:$0x33 pattern:$0x76325410] }
  0xff   : > { %v379_v51 = vcombine.high %v871_v50, %v871_v50 }
 0x101   : > { %510 = vmatprep.mubr.bf16.mxu0 %v379_v51 }
 0x102   : > { %511 = vmatmul.mubr.bf16.vlgmr.msra.gmra.mrb[0].mxu0 %v871_v50 }
 0x1d5   : > { %v926_v55 = vpop.f32.mrb[0].mxu0 }
 0x1d6   : > { %v927_v59 = vpop.f32.mrb[1].mxu0 }
 0x1d7   : > { %v928_v60 = vadd.f32 %v927_v59, %v926_v55  ;;  %v929_v61 = vpop.f32.mrb[2].mxu0 }
 0x1d8   : > { %v930_v62 = vpop.f32.mrb[3].mxu0 }
 0x1d9   : > { %v513_v63 = vadd.f32 %v928_v60, %v870_v58 }
 0x1db   : > { %vm518_vm13 = vcmp.gt.f32.partialorder %v513_v63, 0.0  ;;  %v519_v1 = vmul.f32 0.2, %v513_v63 }
 0x1dd   : > { %v520_v3 = vsel %vm518_vm13, %v513_v63, %v519_v1 }
 0x1de   : > { %v521_v5 = vpack.c.bf16 %v520_v3, %v520_v3 }
 0x1e0   : > { %v529_v6 = vrot.slane %v521_v5, %v1439_v8 }
 0x1e2   : > { %546 = vrot.lane.b32.xlu1 %v529_v6, %s1221_s24  ;;  %v531_v10 = vshrl.u32 %v529_v6, 16  ;;  %v534_v11 = vshll.u32 %v529_v6, 16 }
 0x1e4   : > { %v533_v12 = vrot.slane %v531_v10, 7  ;;  %v551_v13 = vrot.slane %v531_v10, 6  ;;  %v552_v14 = vrot.slane %v534_v11, 7 }
 0x1e6   : > { %v536_v17 = vor.u32 %v534_v11, %v533_v12  ;;  %v553_v18 = vor.u32 %v552_v14, %v551_v13 }
 0x1e8   : > { %537 = vrot.lane.b32.xlu0 %v536_v17, %s1221_s24  ;;  %v554_v8 = vrot.slane %v553_v18, 2 }
 0x1ea   : > { %555 = vrot.lane.b32.xlu1 %v554_v8, %s1221_s24 }
 0x254   : > { %v547_v23 = vpop.permute.xlu1 %546 }
 0x255   : > { %550 = vst.msk [vmem:[#allocation2 + $0x2] sm:$0x3] %vm293_vm1, %v547_v23 }
 0x25a   : > { %v538_v25 = vpop.permute.xlu0 %537 }
 0x25b   : > { %v541_v26 = vsel %vm1447_vm5, %v538_v25, %v540_v24 }
 0x25c   : > { %542 = vst [vmem:[#allocation2] sm:$0x3] %v541_v26  ;;  %v558_v27 = vld [vmem:[#allocation2 + $0x2] sm:$0x3]  ;;  %v556_v28 = vpop.permute.xlu1 %555 }
 0x25d   : > { %v559_v29 = vsel %vm1452_vm6, %v556_v28, %v558_v27 }
 0x25e   : > { %560 = vst [vmem:[#allocation2 + $0x2] sm:$0x3] %v559_v29 }
 0x263   : > { %v543_v30 = vld [vmem:[#allocation2] sm:$0x1] }
 0x264   : > { %v544_v31 = vsel %vm1460_vm11, 0, %v543_v30 }
 0x265   : > { %545 = vst [vmem:[#allocation2] sm:$0x1] %v544_v31  ;;  %v561_v32 = vld [vmem:[#allocation2 + $0x2] sm:$0x2] }
 0x266   : > { %549 = vst.msk [vmem:[#allocation2] sm:$0x3] %vm308_vm3, %v547_v23  ;;  %v562_v33 = vsel %vm1464_vm12, 0, %v561_v32 }
 0x267   : > { %563 = vst [vmem:[#allocation2 + $0x2] sm:$0x2] %v562_v33 }
 0x26e   : > { %v889_v34 = vld.sshfl [vmem:[#allocation2] sm:$0x33 pattern:$0x76325410] }
 0x26f   : > { %v612_v35 = vcombine.high %v889_v34, %v889_v34 }
 0x271   : > { %743 = vmatprep.mubr.bf16.mxu1 %v612_v35 }
 0x272   : > { %744 = vmatmul.mubr.bf16.vlgmr.msra.gmra.mrb[0].mxu1 %v889_v34 }
 0x345   : > { %v948_v36 = vpop.f32.mrb[0].mxu1 }
 0x346   : > { %v949_v38 = vpop.f32.mrb[1].mxu1 }
 0x347   : > { %v950_v39 = vadd.f32 %v949_v38, %v948_v36  ;;  %v951_v40 = vpop.f32.mrb[2].mxu1 }
 0x348   : > { %v952_v41 = vpop.f32.mrb[3].mxu1 }
 0x349   : > { %v746_v42 = vadd.f32 %v950_v39, %v888_v37 }
 0x34b   : > { %v752_v44 = vmul.f32 0.3, %v746_v42 }
 0x34d   : > { %v753_v45 = vadd.f32 %v752_v44, %v751_v43 }
 0x34f   : > { %754 = vst [vmem:[%s268_s7] sm:$0xf] %v753_v45 }
 0x350   : > { %1156 = shalt.err (!%p1153_p2)
}
 0x351   : > { %s1157_s12 = scalar_lea.hbm %s1500_s16, 64  ;;  %s1161_s8 = scalar_lea.hbm %s1549_s5, 128 }
 0x352   : > { %p1158_p13 = scmp.ne.s32.totalorder %s1500_s16, %s1157_s12  ;;  %p1162_p4 = scmp.lt.u32.totalorder %s1500_s16, %s1549_s5 }
 0x353   : > { %p1163_p5 = scmp.lt.u32.totalorder %s1161_s8, %s1157_s12  ;;  %p1165_p11 = scmp.lt.u32.totalorder %s1157_s12, %s1500_s16 }
 0x354   : > { %p1159_p6 = pnand %p1158_p13, %p1571_p0 }
 0x355   : > { %p1164_p8 = por %p1163_p5, %p1162_p4 }
 0x356   : > { %p1160_p10 = pneg %p1159_p6 }
 0x357   : > { %p1166_p1 = por %p1165_p11, %p1164_p8 }
 0x359   : > { %p1167_p3 = pnand %p1166_p1, %p1160_p10 }
 0x35b   : > { %1170 = shalt.err (!%p1167_p3)
}
 0x35c   : > { %964 = dma.vmem_to_hbm [thread:$0]  (%p1571_p0), %s1502_s6, 64, %s1500_s16, %s756_s9  }
 0x35d PF: > { %s781_s28 = sand.u32 1, %s1201_s18   ;;  %p1572_p7 = scmp.ne.s32.totalorder %s1554_s25, 0 }
 0x35e   : > { %p1573_p9 = scmp.ge.s32.totalorder %s1213_s21, 2  ;;  %s782_s7 = scalar_lea.sflag [#allocation5], %s781_s28 }
 0x360   : > { %p978_p12 = pnand %p1573_p9, %p1572_p7 }
 0x362   : > { %1196 = dma.done.wait (!%p978_p12), %s782_s7, 64  }
 0x363   : > { %1198 = vsyncadd (!%p978_p12), %s782_s7, 4294967232  ;;  %p19_p2 = scmp.ge.s32.totalorder %s1363_s14, 4   ;;  %s1574_s18 = smov %s1205_s19 }
 0x364   : > { %s1575_s19 = smov %s1209_s20  ;;  %s1576_s20 = smov %s1379_s27 }
 0x365   : > { %s1577_s21 = smov %s1363_s14  ;;  %21 = sbr.rel (!%p19_p2) target bundleno = 6 (0x6), region = 93 }
 0x36c   :  { %787 = vsyncpa [#allocation4], 1 }
 0x36d   :  { %789 = vsyncpa [#allocation4 + $0x1], 1 }
 0x36e   :  { %790 = vsyncpa [#allocation7], 1 }
 0x36f   :  { %791 = vsyncpa [#allocation5], 1 }
 0x370   :  { %793 = vsyncpa [#allocation5 + $0x1], 1 }

</bundles_post_ra>
